<compile_context>
chip_gen: v5e
topology: v5e:2x2
jax: 0.10.0
libtpu: 0.0.40
codegen_flags: <defaults>
</compile_context>

<pallas_src>
import math
import functools

import jax
import jax.numpy as jnp
from jax.experimental import pallas as pl
from jax.experimental.pallas import tpu as pltpu


MARGIN = math.log(1000.0) * 0.4   # entropy filter margin (forward_and_adapt)
MIX_A = 0.5                       # a = 0.5 in forward_and_adapt


def _round_up(x, m):
    return (x + m - 1) // m * m


def _tent_poem_kernel(x_ref, wf_ref, bf_ref, wmix_ref,
                      mix_ref, ent_ref, acc_ref, *, num_classes):
    """grid = (batch_tiles [parallel], k_tiles [arbitrary, reduction]).

    Fused: K-tiled feature matmul (bf16 MXU, f32 accum) -> bias + ReLU ->
    single pre-mixed head matmul -> softmax entropy (f32, logp-first).
    """
    k = pl.program_id(1)
    nk = pl.num_programs(1)

    @pl.when(k == 0)
    def _init():
        acc_ref[...] = jnp.zeros_like(acc_ref)

    # Partial feature: bf16 operands on the MXU, accumulate in f32.
    acc_ref[...] += jnp.dot(x_ref[...], wf_ref[...],
                            preferred_element_type=jnp.float32)

    @pl.when(k == nk - 1)
    def _finalize():
        # feature = relu(x @ W_feat + b_feat)   (f32)
        feat = jnp.maximum(acc_ref[...] + bf_ref[...], 0.0)          # [TB, D]

        # mix_outputs = feat @ (a*W_head + (1-a)*W_branch)  -- folded in glue.
        mix = jnp.dot(feat.astype(jnp.bfloat16), wmix_ref[...],
                      preferred_element_type=jnp.float32)            # [TB, Cpad]
        mix_ref[...] = mix                                           # lane-dense store

        # softmax_entropy(mix) in f32; padded class lanes pushed to -1e30 so
        # they contribute exactly 0 (exp underflows to 0, 0 * finite = 0).
        if num_classes == mix.shape[-1]:
            logits = mix
        else:
            col = jax.lax.broadcasted_iota(jnp.int32, mix.shape, 1)
            logits = jnp.where(col < num_classes, mix, -1e30)
        m = jnp.max(logits, axis=-1, keepdims=True)
        z = logits - m
        lse = jnp.log(jnp.sum(jnp.exp(z), axis=-1, keepdims=True))
        logp = z - lse
        p = jnp.exp(logp)
        ent_ref[...] = -jnp.sum(p * logp, axis=-1, keepdims=True)    # [TB, 1]

    # TODO(synk): loss.backward() / optimizer.step() adaptation loop, the
    # branch pseudo-label updates and the model/optimizer state resets of
    # tentPOEM are training-time side effects with no forward Pallas
    # equivalent.


@functools.partial(jax.jit, static_argnames=("tb", "tk"))
def tent_poem_forward(x_nchw, w_feat, b_feat, w_head, w_branch, *, tb=16, tk=256):
    """Flatten NCHW, fold the two heads, run the fused Pallas kernel.

    Returns (mix_outputs [B, C], entropys [B], loss scalar)."""
    B = x_nchw.shape[0]
    x_flat = x_nchw.reshape(B, -1)
    Din = x_flat.shape[1]
    D = w_feat.shape[1]
    C = w_head.shape[1]

    # Fold the two heads into one weight (exact: the head mix is linear) and
    # pad the class dim to a lane-dense multiple of 128.
    w_mix = MIX_A * w_head + (1.0 - MIX_A) * w_branch
    c_pad = _round_up(C, 128)
    w_mix_p = jnp.zeros((D, c_pad), jnp.float32).at[:, :C].set(w_mix)

    # bf16 MXU operands (accumulation stays f32 inside the kernel).
    w_mix_bf = w_mix_p.astype(jnp.bfloat16)
    b_feat2 = b_feat.reshape(1, D).astype(jnp.float32)

    # Pad batch / reduction dims to tile multiples (zero K-padding is exact;
    # padded batch rows are sliced away below, so they never touch the loss).
    tb = min(tb, _round_up(B, 8))
    tk = min(tk, _round_up(Din, 128))
    b_pad = _round_up(B, tb)
    din_pad = _round_up(Din, tk)
    # Cast x to bf16 in the wrapper: halves HBM bytes for the dominant stream.
    x_p = jnp.zeros((b_pad, din_pad), jnp.bfloat16).at[:B, :Din].set(
        x_flat.astype(jnp.bfloat16))
    wf_p = jnp.zeros((din_pad, D), jnp.bfloat16).at[:Din, :].set(
        w_feat.astype(jnp.bfloat16))

    n_bt = b_pad // tb
    n_k = din_pad // tk

    kernel = functools.partial(_tent_poem_kernel, num_classes=C)

    mix_pad, ent_pad = pl.pallas_call(
        kernel,
        out_shape=(
            jax.ShapeDtypeStruct((b_pad, c_pad), jnp.float32),
            jax.ShapeDtypeStruct((b_pad, 1), jnp.float32),
        ),
        grid_spec=pltpu.PrefetchScalarGridSpec(
            num_scalar_prefetch=0,
            grid=(n_bt, n_k),
            in_specs=[
                pl.BlockSpec((tb, tk), lambda i, k: (i, k)),       # x tile (bf16)
                pl.BlockSpec((tk, D), lambda i, k: (k, 0)),        # w_feat streamed over K
                pl.BlockSpec((1, D), lambda i, k: (0, 0)),         # b_feat
                pl.BlockSpec((D, c_pad), lambda i, k: (0, 0)),     # pre-mixed head
            ],
            out_specs=[
                pl.BlockSpec((tb, c_pad), lambda i, k: (i, 0)),    # mix_outputs (padded)
                pl.BlockSpec((tb, 1), lambda i, k: (i, 0)),        # per-sample entropy
            ],
            scratch_shapes=[pltpu.VMEM((tb, D), jnp.float32)],     # feature accumulator
        ),
        compiler_params=pltpu.CompilerParams(
            dimension_semantics=("parallel", "arbitrary"),
            vmem_limit_bytes=32 * 1024 * 1024),
    )(x_p, wf_p, b_feat2, w_mix_bf)

    mix = mix_pad[:B, :C]
    ent = ent_pad[:B, 0]

    # Entropy filter + masked mean: tiny O(B) scalar reduce kept in glue so the
    # batch grid axis stays "parallel" (megacore-safe on v7x).
    mask = ent < MARGIN
    cnt = jnp.sum(mask.astype(jnp.float32))
    loss = jnp.sum(jnp.where(mask, ent, 0.0)) / jnp.maximum(cnt, 1.0)
    return mix, ent, loss


if __name__ == "__main__":
    # Small deterministic setup consistent with an NCHW classifier input.
    B, Cin, H, W = 8, 4, 16, 16         # x: [B, channels, spatial, spatial]
    Din = Cin * H * W                   # 1024
    D = 128                             # hidden feature width (synthetic backbone)
    NUM_CLASSES = 10

    key = jax.random.PRNGKey(0)
    kx, kf, kb, kh, kbr = jax.random.split(key, 5)

    x = jax.random.normal(kx, (B, Cin, H, W), dtype=jnp.float32)
    w_feat = jax.random.normal(kf, (Din, D), dtype=jnp.float32) * (1.0 / math.sqrt(Din))
    b_feat = jax.random.normal(kb, (1, D), dtype=jnp.float32) * 0.01
    w_head = jax.random.normal(kh, (D, NUM_CLASSES), dtype=jnp.float32) * (2.0 / math.sqrt(D))
    w_branch = jax.random.normal(kbr, (D, NUM_CLASSES), dtype=jnp.float32) * (2.0 / math.sqrt(D))

    mix_outputs, entropys, loss = tent_poem_forward(x, w_feat, b_feat, w_head, w_branch)
    jax.block_until_ready((mix_outputs, entropys, loss))

    # Pure-JAX reference with the same bf16 MXU operand casting as the kernel.
    x_flat = x.reshape(B, -1)
    feat_ref = jnp.maximum(
        jnp.dot(x_flat.astype(jnp.bfloat16), w_feat.astype(jnp.bfloat16),
                preferred_element_type=jnp.float32) + b_feat, 0.0)
    w_mix_ref = (MIX_A * w_head + (1.0 - MIX_A) * w_branch).astype(jnp.bfloat16)
    mix_ref = jnp.dot(feat_ref.astype(jnp.bfloat16), w_mix_ref,
                      preferred_element_type=jnp.float32)
    logp_ref = jax.nn.log_softmax(mix_ref, axis=1)
    ent_ref = -jnp.sum(jnp.exp(logp_ref) * logp_ref, axis=1)
    mask_ref = ent_ref < MARGIN
    loss_ref = jnp.sum(jnp.where(mask_ref, ent_ref, 0.0)) / jnp.maximum(
        jnp.sum(mask_ref.astype(jnp.float32)), 1.0)

    assert jnp.allclose(mix_outputs, mix_ref, atol=1e-2, rtol=1e-2), \
        float(jnp.max(jnp.abs(mix_outputs - mix_ref)))
    assert jnp.allclose(entropys, ent_ref, atol=1e-2, rtol=1e-2), \
        float(jnp.max(jnp.abs(entropys - ent_ref)))
    assert jnp.allclose(loss, loss_ref, atol=1e-2, rtol=1e-2)

    print("KERNEL_OK")
</pallas_src>

<mosaic_0001>
module attributes {stable_mosaic.version = 11 : i64} {
  func.func @_tent_poem_kernel(%arg0: i32, %arg1: i32, %arg2: memref<8x256xbf16, #tpu.memory_space<vmem>>, %arg3: memref<256x128xbf16, #tpu.memory_space<vmem>>, %arg4: memref<1x128xf32, #tpu.memory_space<vmem>>, %arg5: memref<128x128xbf16, #tpu.memory_space<vmem>>, %arg6: memref<8x128xf32, #tpu.memory_space<vmem>>, %arg7: memref<8x1xf32, #tpu.memory_space<vmem>>, %arg8: memref<8x128xf32, #tpu.memory_space<vmem>>) attributes {dimension_semantics = [#tpu.dimension_semantics<parallel>, #tpu.dimension_semantics<arbitrary>], iteration_bounds = array<i64: 1, 4>, scalar_prefetch = 0 : i64, scratch_operands = 1 : i64, tpu.core_type = #tpu.core_type<tc>, window_params = [{transform_indices = @transform_0, window_bounds = array<i64: 8, 256>}, {transform_indices = @transform_1, window_bounds = array<i64: 256, 128>}, {pipeline_mode = #tpu.pipeline_mode<synchronous>, transform_indices = @transform_2, window_bounds = array<i64: 1, 128>}, {pipeline_mode = #tpu.pipeline_mode<synchronous>, transform_indices = @transform_3, window_bounds = array<i64: 128, 128>}, {transform_indices = @transform_4, window_bounds = array<i64: 8, 128>}, {transform_indices = @transform_5, window_bounds = array<i64: 8, 1>}]} {
    %c0_i32 = arith.constant 0 : i32
    %0 = arith.cmpi eq, %arg1, %c0_i32 : i32
    %1 = arith.extui %0 : i1 to i32
    %c0_i32_0 = arith.constant 0 : i32
    %2 = arith.cmpi ne, %1, %c0_i32_0 : i32
    scf.if %2 {
      %cst_9 = arith.constant 0.000000e+00 : f32
      %12 = vector.broadcast %cst_9 : f32 to vector<8x128xf32>
      %c0_10 = arith.constant 0 : index
      %c0_11 = arith.constant 0 : index
      %13 = vector.load %arg8[%c0_10, %c0_11] : memref<8x128xf32, #tpu.memory_space<vmem>>, vector<8x128xf32>
      tpu.vector_store %arg8[%c0_10, %c0_11], %12 {strides = array<i32>} : memref<8x128xf32, #tpu.memory_space<vmem>>, vector<8x128xf32>,
    } else {
    }
    %c0 = arith.constant 0 : index
    %c0_1 = arith.constant 0 : index
    %3 = vector.load %arg8[%c0, %c0_1] : memref<8x128xf32, #tpu.memory_space<vmem>>, vector<8x128xf32>
    %c0_2 = arith.constant 0 : index
    %c0_3 = arith.constant 0 : index
    %4 = vector.load %arg2[%c0_2, %c0_3] : memref<8x256xbf16, #tpu.memory_space<vmem>>, vector<8x256xbf16>
    %c0_4 = arith.constant 0 : index
    %c0_5 = arith.constant 0 : index
    %5 = vector.load %arg3[%c0_4, %c0_5] : memref<256x128xbf16, #tpu.memory_space<vmem>>, vector<256x128xbf16>
    %cst = arith.constant dense<0.000000e+00> : vector<8x128xf32>
    %6 = tpu.matmul %4, %5, %cst {dimension_numbers = #tpu.dot_dimension_numbers<[1], [0], [0], [1], [0, 0, 1, 1], [], []>} : vector<8x256xbf16>, vector<256x128xbf16>, vector<8x128xf32> -> vector<8x128xf32>
    %7 = arith.addf %3, %6 : vector<8x128xf32>
    %c0_6 = arith.constant 0 : index
    %c0_7 = arith.constant 0 : index
    %8 = vector.load %arg8[%c0_6, %c0_7] : memref<8x128xf32, #tpu.memory_space<vmem>>, vector<8x128xf32>
    tpu.vector_store %arg8[%c0_6, %c0_7], %7 {strides = array<i32>} : memref<8x128xf32, #tpu.memory_space<vmem>>, vector<8x128xf32>,
    %c3_i32 = arith.constant 3 : i32
    %9 = arith.cmpi eq, %arg1, %c3_i32 : i32
    %10 = arith.extui %9 : i1 to i32
    %c0_i32_8 = arith.constant 0 : i32
    %11 = arith.cmpi ne, %10, %c0_i32_8 : i32
    scf.if %11 {
      %c0_9 = arith.constant 0 : index
      %c0_10 = arith.constant 0 : index
      %12 = vector.load %arg8[%c0_9, %c0_10] : memref<8x128xf32, #tpu.memory_space<vmem>>, vector<8x128xf32>
      %c0_11 = arith.constant 0 : index
      %c0_12 = arith.constant 0 : index
      %13 = vector.load %arg4[%c0_11, %c0_12] : memref<1x128xf32, #tpu.memory_space<vmem>>, vector<1x128xf32>
      %14 = vector.broadcast %13 : vector<1x128xf32> to vector<8x128xf32>
      %15 = arith.addf %12, %14 : vector<8x128xf32>
      %cst_13 = arith.constant 0.000000e+00 : f32
      %16 = vector.broadcast %cst_13 : f32 to vector<8x128xf32>
      %17 = arith.maximumf %15, %16 : vector<8x128xf32>
      %18 = arith.truncf %17 : vector<8x128xf32> to vector<8x128xbf16>
      %c0_14 = arith.constant 0 : index
      %c0_15 = arith.constant 0 : index
      %19 = vector.load %arg5[%c0_14, %c0_15] : memref<128x128xbf16, #tpu.memory_space<vmem>>, vector<128x128xbf16>
      %cst_16 = arith.constant dense<0.000000e+00> : vector<8x128xf32>
      %20 = tpu.matmul %18, %19, %cst_16 {dimension_numbers = #tpu.dot_dimension_numbers<[1], [0], [0], [1], [0, 0, 1, 1], [], []>} : vector<8x128xbf16>, vector<128x128xbf16>, vector<8x128xf32> -> vector<8x128xf32>
      %c0_17 = arith.constant 0 : index
      %c0_18 = arith.constant 0 : index
      %21 = vector.load %arg6[%c0_17, %c0_18] : memref<8x128xf32, #tpu.memory_space<vmem>>, vector<8x128xf32>
      tpu.vector_store %arg6[%c0_17, %c0_18], %20 {strides = array<i32>} : memref<8x128xf32, #tpu.memory_space<vmem>>, vector<8x128xf32>,
      %22 = tpu.iota {dimensions = array<i32: 1>} : vector<8x128xi32>
      %c10_i32 = arith.constant 10 : i32
      %23 = vector.broadcast %c10_i32 : i32 to vector<8x128xi32>
      %24 = arith.cmpi slt, %22, %23 : vector<8x128xi32>
      %cst_19 = arith.constant -1.000000e+30 : f32
      %25 = vector.broadcast %cst_19 : f32 to vector<8x128xf32>
      %26 = arith.select %24, %20, %25 : vector<8x128xi1>, vector<8x128xf32>
      %cst_20 = arith.constant dense<0xFF800000> : vector<8xf32>
      %27 = vector.multi_reduction <maximumf>, %26, %cst_20 [1] : vector<8x128xf32> to vector<8xf32>
      %28 = vector.shape_cast %27 : vector<8xf32> to vector<8x1xf32>
      %29 = vector.broadcast %28 : vector<8x1xf32> to vector<8x128xf32>
      %30 = arith.subf %26, %29 : vector<8x128xf32>
      %31 = math.exp %30 : vector<8x128xf32>
      %cst_21 = arith.constant dense<0.000000e+00> : vector<8xf32>
      %32 = vector.multi_reduction <add>, %31, %cst_21 [1] : vector<8x128xf32> to vector<8xf32>
      %33 = vector.shape_cast %32 : vector<8xf32> to vector<8x1xf32>
      %34 = math.log %33 : vector<8x1xf32>
      %35 = vector.broadcast %34 : vector<8x1xf32> to vector<8x128xf32>
      %36 = arith.subf %30, %35 : vector<8x128xf32>
      %37 = math.exp %36 : vector<8x128xf32>
      %38 = arith.mulf %37, %36 : vector<8x128xf32>
      %cst_22 = arith.constant dense<0.000000e+00> : vector<8xf32>
      %39 = vector.multi_reduction <add>, %38, %cst_22 [1] : vector<8x128xf32> to vector<8xf32>
      %40 = vector.shape_cast %39 : vector<8xf32> to vector<8x1xf32>
      %cst_23 = arith.constant 0.000000e+00 : f32
      %41 = vector.broadcast %cst_23 : f32 to vector<8x1xf32>
      %42 = arith.subf %41, %40 : vector<8x1xf32>
      %c0_24 = arith.constant 0 : index
      %c0_25 = arith.constant 0 : index
      %43 = vector.load %arg7[%c0_24, %c0_25] : memref<8x1xf32, #tpu.memory_space<vmem>>, vector<8x1xf32>
      tpu.vector_store %arg7[%c0_24, %c0_25], %42 {strides = array<i32>} : memref<8x1xf32, #tpu.memory_space<vmem>>, vector<8x1xf32>,
    } else {
    }
    return
  }
  func.func @transform_0(%arg0: i32, %arg1: i32) -> (i32, i32) {
    %c0_i32 = arith.constant 0 : i32
    return %arg0, %arg1 : i32, i32
  }
  func.func @transform_1(%arg0: i32, %arg1: i32) -> (i32, i32) {
    %c0_i32 = arith.constant 0 : i32
    %c0_i32_0 = arith.constant 0 : i32
    return %arg1, %c0_i32 : i32, i32
  }
  func.func @transform_2(%arg0: i32, %arg1: i32) -> (i32, i32) {
    %c0_i32 = arith.constant 0 : i32
    %c0_i32_0 = arith.constant 0 : i32
    %c0_i32_1 = arith.constant 0 : i32
    return %c0_i32, %c0_i32_0 : i32, i32
  }
  func.func @transform_3(%arg0: i32, %arg1: i32) -> (i32, i32) {
    %c0_i32 = arith.constant 0 : i32
    %c0_i32_0 = arith.constant 0 : i32
    %c0_i32_1 = arith.constant 0 : i32
    return %c0_i32, %c0_i32_0 : i32, i32
  }
  func.func @transform_4(%arg0: i32, %arg1: i32) -> (i32, i32) {
    %c0_i32 = arith.constant 0 : i32
    %c0_i32_0 = arith.constant 0 : i32
    return %arg0, %c0_i32 : i32, i32
  }
  func.func @transform_5(%arg0: i32, %arg1: i32) -> (i32, i32) {
    %c0_i32 = arith.constant 0 : i32
    %c0_i32_0 = arith.constant 0 : i32
    return %arg0, %c0_i32 : i32, i32
  }
}

</mosaic_0001>

<bundles_post_ra>
// kernel: tent_poem_forward.1
= control target key start
LH: loop header
LB: loop body
LE: loop exit
PB: predicated region body
PF: predicated region fallthrough
CT: control target
= control target key end

     0   :  { %11 = vsyncpa [#allocation4], 0  ;;  %s928_s18 = smov 0   ;;  %s930_s19 = smov 0   ;;  %s1024_s0 = inlined_call_operand.vmem [shape: bf16[8,1024], index: 0, kind: input, shape index: {}]   ;;  %s1025_s1 = inlined_call_operand.vmem [shape: bf16[1024,128], index: 1, kind: input, shape index: {}]   ;;  %s1026_s2 = inlined_call_operand.vmem [shape: f32[1,128], index: 2, kind: input, shape index: {}]   ;;  %s1027_s3 = inlined_call_operand.vmem [shape: bf16[128,128], index: 3, kind: input, shape index: {}]   ;;  %s1028_s4 = inlined_call_operand.hbm [shape: f32[8,128], index: 4, kind: output, shape index: {0}]   ;;  %s1029_s5 = inlined_call_operand.vmem [shape: f32[8,1], index: 5, kind: output, shape index: {1}]  }
   0x1   :  { %s932_s20 = smov 0  }
   0x2 LB: > { %s666_s21 = sadd.s32 4294967295, %s894_s20   ;;  %s26_s22 = sadd.s32 1, %s890_s19  ;;  %s894_s20 = sphi %s932_s20, %s17_s20   ;;  %s890_s19 = sphi %s930_s19, %s1031_s19   ;;  %s886_s18 = sphi %s928_s18, %s1030_s18  }
   0x3   : > { %p27_p0 = scmp.ge.s32.totalorder %s26_s22, 4  ;;  %p669_p1 = scmp.ge.s32.totalorder %s894_s20, 1 }
   0x4   : > { %p221_p2 = scmp.lt.s32.totalorder %s894_s20, 5 }
   0x5   : > { %s1033_s22 = smov (%p27_p0, %s26_s22), 0 }
   0x6   : > { %p222_p3 = pnand %p669_p1, %p221_p2 }
   0x7   : > { %s670_s23 = sshll.u32 (!%p222_p3), %s886_s18, 1  ;;  %s672_s24 = sshll.u32 (!%p222_p3), %s886_s18, 5 }
   0x8   : > { %225 = sbr.rel (%p222_p3) target bundleno = 739 (0x2e3), region = 36  ;;  %p260_p4 = scmp.lt.s32.totalorder (!%p222_p3), %s670_s23, 7 }
   0x9   : > { %p268_p5 = scmp.lt.s32.totalorder (!%p222_p3), %s672_s24, 127  ;;  %p674_p6 = scmp.ne.s32.totalorder (!%p222_p3), %s886_s18, 0 }
   0xd   : > { %s1035_s23 = smov (!%p260_p4, %s670_s23), 7  ;;  %s1037_s24 = smov (!%p268_p5, %s672_s24), 127 }
   0xe   : > { %s671_s25 = sshll.u32 %s1035_s23, 2  ;;  %s673_s29 = sshll.u32 %s1037_s24, 2 }
   0xf   : > { %s954_s28 = scalar_lea.vmem %s1024_s0, %s671_s25  ;;  %s959_s7 = scalar_lea.vmem %s1025_s1, %s673_s29 }
  0x10   : > { %280 = sbr.rel (%p674_p6) target bundleno = 23 (0x17), region = 40 }
  0x15   : > { %v896_v0 = vmov 0.0  }
  0x16   : > { %281 = vst [vmem:[#allocation2] sm:$0xff] %v896_v0 }
  0x17 PF: > { %v784_v1 = vld [vmem:[%s959_s7 + $0x38] sm:$0xff]  ;;  %v783_v3 = vld [vmem:[%s959_s7 + $0x30] sm:$0xff]  ;;  %v782_v5 = vld [vmem:[%s959_s7 + $0x28] sm:$0xff]  ;;  %p739_p7 = scmp.ne.s32.totalorder %s886_s18, 3 }
  0x18   : > { %v792_v2 = vld [vmem:[%s959_s7 + $0x78] sm:$0xff]  ;;  %419 = vmatpush.bf16.msra.mxu0 %v784_v1  ;;  %v791_v4 = vld [vmem:[%s959_s7 + $0x70] sm:$0xff]  ;;  %v790_v6 = vld [vmem:[%s959_s7 + $0x68] sm:$0xff] }
  0x19   : > { %432 = vmatpush.bf16.msra.mxu1 %v792_v2  ;;  %v781_v7 = vld [vmem:[%s959_s7 + $0x20] sm:$0xff]  ;;  %v780_v9 = vld [vmem:[%s959_s7 + $0x18] sm:$0xff]  ;;  %v779_v11 = vld [vmem:[%s959_s7 + $0x10] sm:$0xff] }
  0x1a   : > { %v789_v8 = vld [vmem:[%s959_s7 + $0x60] sm:$0xff]  ;;  %v788_v10 = vld [vmem:[%s959_s7 + $0x58] sm:$0xff]  ;;  %v787_v12 = vld [vmem:[%s959_s7 + $0x50] sm:$0xff] }
  0x1b   : > { %v778_v13 = vld [vmem:[%s959_s7 + $0x8] sm:$0xff]  ;;  %v283_v15 = vld [vmem:[%s954_s28] sm:$0xff] }
  0x1c   : > { %420 = vmatpush.bf16.msra.mxu0 %v783_v3  ;;  %v786_v14 = vld [vmem:[%s959_s7 + $0x48] sm:$0xff]  ;;  %v317_v16 = vunpack.c.l.b16 %v283_v15  ;;  %v318_v17 = vunpack.c.h.b16 %v283_v15  ;;  %v777_v18 = vld [vmem:[%s959_s7] sm:$0xff] }
  0x1d   : > { %433 = vmatpush.bf16.msra.mxu1 %v791_v4  ;;  %v785_v19 = vld [vmem:[%s959_s7 + $0x40] sm:$0xff] }
  0x1e   : > { %v319_v20 = vpack.c.b16 %v317_v16, %v317_v16  ;;  %v320_v21 = vpack.c.b16 %v318_v17, %v318_v17  ;;  %v282_v23 = vld [vmem:[#allocation2] sm:$0xff] }
  0x20   : > { %421 = vmatpush.bf16.msra.mxu0 %v782_v5 }
  0x21   : > { %434 = vmatpush.bf16.msra.mxu1 %v790_v6 }
  0x24   : > { %422 = vmatpush.bf16.msra.mxu0 %v781_v7 }
  0x25   : > { %435 = vmatpush.bf16.msra.mxu1 %v789_v8 }
  0x28   : > { %423 = vmatpush.bf16.msra.mxu0 %v780_v9 }
  0x29   : > { %436 = vmatpush.bf16.msra.mxu1 %v788_v10 }
  0x2c   : > { %424 = vmatpush.bf16.msra.mxu0 %v779_v11 }
  0x2d   : > { %437 = vmatpush.bf16.msra.mxu1 %v787_v12 }
  0x30   : > { %425 = vmatpush.bf16.msra.mxu0 %v778_v13 }
  0x31   : > { %438 = vmatpush.bf16.msra.mxu1 %v786_v14 }
  0x34   : > { %426 = vmatpush.bf16.msra.mxu0 %v777_v18 }
  0x35   : > { %439 = vmatpush.bf16.msra.mxu1 %v785_v19 }
  0x37   : > { %427 = vmatmul.bf16.vlgmr.msra.gmra.mxu0 %v319_v20 }
  0x38   : > { %440 = vmatmul.bf16.vlgmr.msra.gmra.mxu1 %v320_v21 }
  0xb4   : > { %v428_v22 = vpop.f32.mrf.mxu0 }
  0xb5   : > { %v441_v24 = vpop.f32.mrf.mxu1 }
  0xb6   : > { %v442_v25 = vadd.f32 %v441_v24, %v428_v22 }
  0xb8   : > { %v445_v26 = vadd.f32 %v442_v25, %v282_v23 }
  0xb9   : > { %450 = sbr.rel (%p739_p7) target bundleno = 733 (0x2dd), region = 44 }
  0xba   : > { %446 = vst [vmem:[#allocation2] sm:$0xff] %v445_v26 }
  0xbc   : > { %v430_v27 = vpop.f32.mrf.mxu0 }
  0xbd   : > { %v443_v28 = vpop.f32.mrf.mxu1 }
  0xbe   : > { %v800_v29 = vld [vmem:[%s1027_s3 + $0x38] sm:$0xff]  ;;  %v799_v30 = vld [vmem:[%s1027_s3 + $0x30] sm:$0xff]  ;;  %v798_v31 = vld [vmem:[%s1027_s3 + $0x28] sm:$0xff]  ;;  %v537_v42 = vlaneseq  ;;  %vm557_vm1 = vcmask 7168  }
  0xbf   : > { %523 = vmatpush.bf16.msra.mxu0 %v800_v29  ;;  %v797_v32 = vld [vmem:[%s1027_s3 + $0x20] sm:$0xff]  ;;  %v796_v33 = vld [vmem:[%s1027_s3 + $0x18] sm:$0xff]  ;;  %v795_v35 = vld [vmem:[%s1027_s3 + $0x10] sm:$0xff] }
  0xc0   : > { %v833_v34 = vld [vmem:[%s1026_s2] ss:$0 sm:$0xff]  ;;  %v794_v38 = vld [vmem:[%s1027_s3 + $0x8] sm:$0xff]  ;;  %v538_v43 = vand.u32 127, %v537_v42 }
  0xc1   : > { %v451_v36 = vld [vmem:[#allocation2] sm:$0xff] }
  0xc2   : > { %v456_v37 = vadd.f32 %v833_v34, %v451_v36  ;;  %v793_v40 = vld [vmem:[%s1027_s3] sm:$0xff]  ;;  %vm539_vm0 = vcmp.lt.s32.totalorder %v538_v43, 10 }
  0xc3   : > { %524 = vmatpush.bf16.msra.mxu0 %v799_v30 }
  0xc4   : > { %v457_v39 = vmax.f32 %v456_v37, 0.0 }
  0xc6   : > { %v458_v41 = vpack.c.bf16 %v457_v39, %v457_v39 }
  0xc7   : > { %525 = vmatpush.bf16.msra.mxu0 %v798_v31 }
  0xcb   : > { %526 = vmatpush.bf16.msra.mxu0 %v797_v32 }
  0xcf   : > { %527 = vmatpush.bf16.msra.mxu0 %v796_v33 }
  0xd3   : > { %528 = vmatpush.bf16.msra.mxu0 %v795_v35 }
  0xd7   : > { %529 = vmatpush.bf16.msra.mxu0 %v794_v38 }
  0xdb   : > { %530 = vmatpush.bf16.msra.mxu0 %v793_v40 }
  0xde   : > { %531 = vmatmul.bf16.vlgmr.msra.gmra.mxu0 %v458_v41 }
 0x15b   : > { %v532_v44 = vpop.f32.mrf.mxu0 }
 0x15c   : > { %536 = vst [vmem:[#allocation3] sm:$0xff] %v532_v44  ;;  %v540_v45 = vsel %vm539_vm0, %v532_v44, -1e+30 }
 0x15d   : > { %541 = vmax.xlane.f32.xlu0 %v540_v45 }
 0x163   : > { %v534_v46 = vpop.f32.mrf.mxu0 }
 0x1d0   : > { %v542_v47 = vpop.xlane.xlu0 %541 }
 0x1d1   : > { %v543_v48 = vsub.f32 %v540_v45, %v542_v47 }
 0x1d3   : > { %v544_v49 = vmul.f32 1.442695, %v543_v48 }
 0x1d5   : > { %834 = vpow2.f32 %v544_v49 }
 0x1db   : > { %v835_v50 = vpop.eup %834 }
 0x1dc   : > { %546 = vadd.xlane.f32.xlu0 %v835_v50 }
 0x24f   : > { %v547_v51 = vpop.xlane.xlu0 %546 }
 0x250   : > { %836 = vlog2.f32 %v547_v51 }
 0x256   : > { %v837_v52 = vpop.eup %836 }
 0x257   : > { %v549_v53 = vmul.f32 0.6931472, %v837_v52 }
 0x259   : > { %v550_v54 = vsub.f32 %v543_v48, %v549_v53 }
 0x25b   : > { %v551_v55 = vmul.f32 1.442695, %v550_v54 }
 0x25d   : > { %838 = vpow2.f32 %v551_v55 }
 0x263   : > { %v839_v56 = vpop.eup %838 }
 0x264   : > { %v553_v57 = vmul.f32 %v839_v56, %v550_v54 }
 0x266   : > { %554 = vadd.xlane.f32.xlu1 %v553_v57 }
 0x2d9   : > { %v555_v58 = vpop.xlane.xlu1 %554 }
 0x2da   : > { %v556_v59 = vsub.f32 0.0, %v555_v58 }
 0x2dc   : > { %558 = vst.msk [vmem:[%s1029_s5] sm:$0xff] %vm557_vm1, %v556_v59 }
 0x2dd PF: > { %p805_p8 = scmp.eq.s32.totalorder %s666_s21, 3  ;;  %s573_s9 = sshll.u32 %s1028_s4, 4  ;;  %s574_s9 = int_to_ptr.hbm [resolvable:$true] %s573_s9 }
 0x2de   : > { %s897_s10 = smov [#allocation3]  }
 0x2df   : > { %s571_s11 = sshll.u32 %s897_s10, 4  ;;  %s572_s11 = int_to_ptr.vmem [resolvable:$true] %s571_s11 }
 0x2e0   : > { %802 = dma.vmem_to_hbm [thread:$0]  (%p805_p8), %s572_s11, 128, %s574_s9, [#allocation4]  }
 0x2e1   : > { %881 = dma.done.wait (%p805_p8), [#allocation4], 128  }
 0x2e2   : > { %883 = vsyncadd (%p805_p8), [#allocation4], 4294967168 }
 0x2e3 PF: > { %s17_s20 = sadd.s32 1, %s894_s20   ;;  %s1030_s18 = smov %s890_s19 }
 0x2e4   : > { %p14_p9 = scmp.ge.s32.totalorder %s17_s20, 6   ;;  %s1031_s19 = smov %s1033_s22 }
 0x2e6   :  { %16 = sbr.rel (!%p14_p9) target bundleno = 2 (0x2), region = 87 }
 0x2eb   :  { %597 = vsyncpa [#allocation4], 1 }
 0x2ec   :  { %599 = vsyncpa [#allocation4 + $0x1], 1 }

</bundles_post_ra>
